<compile_context>
chip_gen: v7x
topology: tpu7x:2x2x1
jax: 0.10.0
libtpu: 0.0.40
codegen_flags: <defaults>
</compile_context>

<pallas_src>
import jax
import jax.numpy as jnp
from jax.experimental import pallas as pl
from jax.experimental.pallas import tpu as pltpu

EPS = 1e-8
LANES = 128


def _round_up(x, m):
    return ((x + m - 1) // m) * m


def _tensorcores_per_chip():
    """2 on v7x (two TensorCores per chip); 1 on v5e/v6e (single TC)."""
    try:
        kind = jax.devices()[0].device_kind.lower()
    except Exception:
        return 1
    return 2 if "7" in kind else 1


def _make_kernel(n, block_rows, blocks_per_core, full_blocks):
    block_elems = block_rows * LANES
    sub = block_rows // 8

    def kernel(p_ref, g_ref, out_ref):
        c = pl.program_id(0)            # core chunk
        s = pl.program_id(1)            # streaming step within the chunk
        logical_b = c * blocks_per_core + s

        # Zero this chunk's resident (1, 8, 128) accumulator block.
        @pl.when(s == 0)
        def _():
            out_ref[...] = jnp.zeros_like(out_ref)

        # Inputs stream in their native (possibly 16-bit) dtype; upcast on VPU.
        p = p_ref[...].astype(jnp.float32)
        g = g_ref[...].astype(jnp.float32)
        # Accumulate only s_i = sqrt(p*g+eps) + sqrt((1-p)*(1-g)+eps);
        # mean(1 - s_i) == 1 - sum(s_i)/n is applied in the wrapper.
        # (jnp.sqrt lowers to a single EUP push per element.)
        s_val = jnp.sqrt(p * g + EPS) + jnp.sqrt((1.0 - p) * (1.0 - g) + EPS)

        # Fast path: block fully in-bounds -> plain VALU fold into (8, 128).
        @pl.when(logical_b < full_blocks)
        def _():
            out_ref[0] += jnp.sum(s_val.reshape(sub, 8, LANES), axis=0)

        # Ragged / out-of-range block: mask elements whose flat index >= n
        # (covers the 128-pad tail, overhanging rows, and fully-OOB blocks).
        @pl.when(logical_b >= full_blocks)
        def _():
            rem = n - logical_b * block_elems       # <= 0 for fully-OOB blocks
            row = jax.lax.broadcasted_iota(jnp.int32, (block_rows, LANES), 0)
            col = jax.lax.broadcasted_iota(jnp.int32, (block_rows, LANES), 1)
            # NOTE: keep this as a select (jnp.where), NOT a multiply-by-mask:
            # overhanging rows of a ragged block hold unspecified data, so
            # sqrt() of them may be NaN; the select discards it, a multiply
            # would propagate it into the accumulator.
            masked = jnp.where(row * LANES + col < rem, s_val, 0.0)
            out_ref[0] += jnp.sum(masked.reshape(sub, 8, LANES), axis=0)

    return kernel


def fidelity_loss(p, g):
    """Pallas implementation of Fidelity_Loss.forward(p, g)."""

    def _prep(x):
        x = jnp.reshape(x, (-1,))
        # Stream sub-32-bit floats natively (halves HBM reads); upcast
        # in-kernel.  Anything else (f64/int) is cast in the wrapper.
        if x.dtype not in (jnp.bfloat16, jnp.float16, jnp.float32):
            x = x.astype(jnp.float32)
        return x

    p_flat = _prep(p)
    g_flat = _prep(g)
    n = int(p_flat.shape[0])
    if int(g_flat.shape[0]) != n:
        raise ValueError("p and g must have the same number of elements")
    if n >= 2 ** 31:
        # The in-kernel tail mask uses 32-bit flat indices.
        raise ValueError("fidelity_loss supports at most 2**31 - 1 elements")

    # Pad only to a multiple of 128 lanes (skipped when already aligned) so the
    # flat vector can be viewed as a lane-dense (rows, 128) slab.  The ragged
    # tail is masked inside the kernel, so the pad value is irrelevant.
    rows = pl.cdiv(n, LANES)
    if rows * LANES != n:
        pad = rows * LANES - n
        p_flat = jnp.pad(p_flat, (0, pad))
        g_flat = jnp.pad(g_flat, (0, pad))
    p2 = p_flat.reshape(rows, LANES)
    g2 = g_flat.reshape(rows, LANES)

    num_cores = _tensorcores_per_chip()
    # Bigger streaming blocks on 128-MiB-VMEM single-TC chips (v5e/v6e); keep
    # 4096 rows (2 MiB f32 / stream / buffer) on 64-MiB-VMEM v7x.  Explicit
    # scoped-VMEM limit leaves headroom for intermediates + double buffering.
    max_block_rows = 4096 if num_cores > 1 else 8192
    vmem_limit = (48 << 20) if num_cores > 1 else (64 << 20)

    block_rows = min(max_block_rows, _round_up(rows, 8))
    num_blocks = pl.cdiv(rows, block_rows)

    if num_blocks < num_cores:
        num_cores = 1                   # tiny input: skip the core axis split
    blocks_per_core = pl.cdiv(num_blocks, num_cores)
    if num_cores > 1 and num_cores * blocks_per_core != num_blocks:
        # Rebalance block_rows so the rectangular (core, step) grid covers the
        # rows exactly -> no wasted duplicate-block DMA on the overhang step.
        total = num_cores * blocks_per_core
        cand = _round_up(pl.cdiv(rows, total), 8)
        if pl.cdiv(rows, cand) == total:
            block_rows = cand
            num_blocks = total

    full_blocks = n // (block_rows * LANES)

    def in_index_map(c, s):
        b = c * blocks_per_core + s
        # Normally exact by construction above; the clamp is only a safety
        # net (clamped steps are fully masked to zero in-kernel).
        return (jnp.minimum(b, num_blocks - 1), 0)

    in_spec = pl.BlockSpec((block_rows, LANES), in_index_map)
    out_spec = pl.BlockSpec((1, 8, LANES), lambda c, s: (c, 0, 0))

    kernel = _make_kernel(n, block_rows, blocks_per_core, full_blocks)

    if num_cores > 1:
        # Genuine TensorCore split on v7x (plain "parallel" does not change
        # codegen); each core owns its own output block and HBM stream.
        dim_sem = (pltpu.CORE_PARALLEL, pltpu.ARBITRARY)
    else:
        dim_sem = (pltpu.ARBITRARY, pltpu.ARBITRARY)

    partials = pl.pallas_call(
        kernel,
        out_shape=jax.ShapeDtypeStruct((num_cores, 8, LANES), jnp.float32),
        grid_spec=pltpu.PrefetchScalarGridSpec(
            num_scalar_prefetch=0,
            grid=(num_cores, blocks_per_core),
            in_specs=[in_spec, in_spec],
            out_specs=out_spec,
        ),
        compiler_params=pltpu.CompilerParams(
            dimension_semantics=dim_sem,
            vmem_limit_bytes=vmem_limit,
        ),
    )(p2, g2)

    # Tiny final reduction (num_cores * 8 * 128 f32) + "1 - mean" in the
    # wrapper.  Note: single running f32 accumulation per lane can drift a few
    # ULPs vs a tree reduction for n ~ 1e9; acceptable for a loss.
    return (1.0 - jnp.sum(partials) / jnp.float32(n)).astype(jnp.float32)


def fidelity_loss_ref(p, g):
    p = jnp.reshape(p, (-1, 1)).astype(jnp.float32)
    g = jnp.reshape(g, (-1, 1)).astype(jnp.float32)
    loss = 1.0 - (jnp.sqrt(p * g + EPS) + jnp.sqrt((1.0 - p) * (1.0 - g) + EPS))
    return jnp.mean(loss)


if __name__ == "__main__":
    key = jax.random.PRNGKey(0)
    kp, kg = jax.random.split(key)

    # Probability-like inputs in [0, 1].
    shape = (2, 4, 16, 16)
    p = jax.random.uniform(kp, shape, dtype=jnp.float32)
    g = jax.random.uniform(kg, shape, dtype=jnp.float32)

    out = jax.block_until_ready(fidelity_loss(p, g))
    ref = jax.block_until_ready(fidelity_loss_ref(p, g))
    assert jnp.allclose(out, ref, atol=1e-6, rtol=1e-6), (out, ref)

    # Ragged size (n not a multiple of 128) to exercise the in-kernel masking.
    kp2, kg2 = jax.random.split(kg)
    shape2 = (3, 5, 7)
    p2 = jax.random.uniform(kp2, shape2, dtype=jnp.float32)
    g2 = jax.random.uniform(kg2, shape2, dtype=jnp.float32)

    out2 = jax.block_until_ready(fidelity_loss(p2, g2))
    ref2 = jax.block_until_ready(fidelity_loss_ref(p2, g2))
    assert jnp.allclose(out2, ref2, atol=1e-6, rtol=1e-6), (out2, ref2)

    # bf16 inputs stream natively (upcast happens in-kernel).
    p3 = p.astype(jnp.bfloat16)
    g3 = g.astype(jnp.bfloat16)
    out3 = jax.block_until_ready(fidelity_loss(p3, g3))
    ref3 = jax.block_until_ready(fidelity_loss_ref(p3, g3))
    assert jnp.allclose(out3, ref3, atol=2e-3, rtol=2e-3), (out3, ref3)

    print("KERNEL_OK")
</pallas_src>

<mosaic_0001>
module attributes {stable_mosaic.version = 11 : i64} {
  func.func @kernel(%arg0: i32, %arg1: i32, %arg2: memref<16x128xf32, #tpu.memory_space<vmem>>, %arg3: memref<16x128xf32, #tpu.memory_space<vmem>>, %arg4: memref<1x8x128xf32, #tpu.memory_space<vmem>>) attributes {dimension_semantics = [#tpu.dimension_semantics<arbitrary>, #tpu.dimension_semantics<arbitrary>], iteration_bounds = array<i64: 1, 1>, scalar_prefetch = 0 : i64, scratch_operands = 0 : i64, tpu.core_type = #tpu.core_type<tc>, window_params = [{transform_indices = @transform_0, window_bounds = array<i64: 16, 128>}, {transform_indices = @transform_1, window_bounds = array<i64: 16, 128>}, {transform_indices = @transform_2, window_bounds = array<i64: 1, 8, 128>}]} {
    %c1_i32 = arith.constant 1 : i32
    %0 = arith.muli %arg0, %c1_i32 : i32
    %1 = arith.addi %0, %arg1 : i32
    %c0_i32 = arith.constant 0 : i32
    %2 = arith.cmpi eq, %arg1, %c0_i32 : i32
    %3 = arith.extui %2 : i1 to i32
    %c0_i32_0 = arith.constant 0 : i32
    %4 = arith.cmpi ne, %3, %c0_i32_0 : i32
    scf.if %4 {
      %cst_11 = arith.constant 0.000000e+00 : f32
      %26 = vector.broadcast %cst_11 : f32 to vector<1x8x128xf32>
      %c0_12 = arith.constant 0 : index
      %c0_13 = arith.constant 0 : index
      %c0_14 = arith.constant 0 : index
      %27 = vector.load %arg4[%c0_12, %c0_13, %c0_14] : memref<1x8x128xf32, #tpu.memory_space<vmem>>, vector<1x8x128xf32>
      tpu.vector_store %arg4[%c0_12, %c0_13, %c0_14], %26 {strides = array<i32>} : memref<1x8x128xf32, #tpu.memory_space<vmem>>, vector<1x8x128xf32>,
    } else {
    }
    %c0 = arith.constant 0 : index
    %c0_1 = arith.constant 0 : index
    %5 = vector.load %arg2[%c0, %c0_1] : memref<16x128xf32, #tpu.memory_space<vmem>>, vector<16x128xf32>
    %c0_2 = arith.constant 0 : index
    %c0_3 = arith.constant 0 : index
    %6 = vector.load %arg3[%c0_2, %c0_3] : memref<16x128xf32, #tpu.memory_space<vmem>>, vector<16x128xf32>
    %7 = arith.mulf %5, %6 : vector<16x128xf32>
    %cst = arith.constant 9.99999993E-9 : f32
    %8 = vector.broadcast %cst : f32 to vector<16x128xf32>
    %9 = arith.addf %7, %8 : vector<16x128xf32>
    %10 = math.sqrt %9 : vector<16x128xf32>
    %cst_4 = arith.constant 1.000000e+00 : f32
    %11 = vector.broadcast %cst_4 : f32 to vector<16x128xf32>
    %12 = arith.subf %11, %5 : vector<16x128xf32>
    %cst_5 = arith.constant 1.000000e+00 : f32
    %13 = vector.broadcast %cst_5 : f32 to vector<16x128xf32>
    %14 = arith.subf %13, %6 : vector<16x128xf32>
    %15 = arith.mulf %12, %14 : vector<16x128xf32>
    %cst_6 = arith.constant 9.99999993E-9 : f32
    %16 = vector.broadcast %cst_6 : f32 to vector<16x128xf32>
    %17 = arith.addf %15, %16 : vector<16x128xf32>
    %18 = math.sqrt %17 : vector<16x128xf32>
    %19 = arith.addf %10, %18 : vector<16x128xf32>
    %c1_i32_7 = arith.constant 1 : i32
    %20 = arith.cmpi slt, %1, %c1_i32_7 : i32
    %21 = arith.extui %20 : i1 to i32
    %c0_i32_8 = arith.constant 0 : i32
    %22 = arith.cmpi ne, %21, %c0_i32_8 : i32
    scf.if %22 {
      %c0_11 = arith.constant 0 : index
      %c0_12 = arith.constant 0 : index
      %c0_13 = arith.constant 0 : index
      %26 = vector.load %arg4[%c0_11, %c0_12, %c0_13] : memref<1x8x128xf32, #tpu.memory_space<vmem>>, vector<1x8x128xf32>
      %27 = vector.shape_cast %26 : vector<1x8x128xf32> to vector<8x128xf32>
      %28 = vector.shape_cast %19 : vector<16x128xf32> to vector<2x8x128xf32>
      %cst_14 = arith.constant dense<0.000000e+00> : vector<8x128xf32>
      %29 = vector.multi_reduction <add>, %28, %cst_14 [0] : vector<2x8x128xf32> to vector<8x128xf32>
      %30 = arith.addf %27, %29 : vector<8x128xf32>
      %c0_15 = arith.constant 0 : index
      %c0_16 = arith.constant 0 : index
      %c0_17 = arith.constant 0 : index
      %31 = vector.load %arg4[%c0_15, %c0_16, %c0_17] : memref<1x8x128xf32, #tpu.memory_space<vmem>>, vector<1x8x128xf32>
      %32 = vector.shape_cast %31 : vector<1x8x128xf32> to vector<8x128xf32>
      %33 = vector.shape_cast %30 : vector<8x128xf32> to vector<1x8x128xf32>
      tpu.vector_store %arg4[%c0_15, %c0_16, %c0_17], %33 {strides = array<i32>} : memref<1x8x128xf32, #tpu.memory_space<vmem>>, vector<1x8x128xf32>,
    } else {
    }
    %c1_i32_9 = arith.constant 1 : i32
    %23 = arith.cmpi sge, %1, %c1_i32_9 : i32
    %24 = arith.extui %23 : i1 to i32
    %c0_i32_10 = arith.constant 0 : i32
    %25 = arith.cmpi ne, %24, %c0_i32_10 : i32
    scf.if %25 {
      %c2048_i32 = arith.constant 2048 : i32
      %26 = arith.muli %1, %c2048_i32 : i32
      %c2048_i32_11 = arith.constant 2048 : i32
      %27 = arith.subi %c2048_i32_11, %26 : i32
      %28 = tpu.iota {dimensions = array<i32: 0>} : vector<16x128xi32>
      %29 = tpu.iota {dimensions = array<i32: 1>} : vector<16x128xi32>
      %c128_i32 = arith.constant 128 : i32
      %30 = vector.broadcast %c128_i32 : i32 to vector<16x128xi32>
      %31 = arith.muli %28, %30 : vector<16x128xi32>
      %32 = arith.addi %31, %29 : vector<16x128xi32>
      %33 = vector.broadcast %27 : i32 to vector<16x128xi32>
      %34 = arith.cmpi slt, %32, %33 : vector<16x128xi32>
      %cst_12 = arith.constant 0.000000e+00 : f32
      %35 = vector.broadcast %cst_12 : f32 to vector<16x128xf32>
      %36 = arith.select %34, %19, %35 : vector<16x128xi1>, vector<16x128xf32>
      %c0_13 = arith.constant 0 : index
      %c0_14 = arith.constant 0 : index
      %c0_15 = arith.constant 0 : index
      %37 = vector.load %arg4[%c0_13, %c0_14, %c0_15] : memref<1x8x128xf32, #tpu.memory_space<vmem>>, vector<1x8x128xf32>
      %38 = vector.shape_cast %37 : vector<1x8x128xf32> to vector<8x128xf32>
      %39 = vector.shape_cast %36 : vector<16x128xf32> to vector<2x8x128xf32>
      %cst_16 = arith.constant dense<0.000000e+00> : vector<8x128xf32>
      %40 = vector.multi_reduction <add>, %39, %cst_16 [0] : vector<2x8x128xf32> to vector<8x128xf32>
      %41 = arith.addf %38, %40 : vector<8x128xf32>
      %c0_17 = arith.constant 0 : index
      %c0_18 = arith.constant 0 : index
      %c0_19 = arith.constant 0 : index
      %42 = vector.load %arg4[%c0_17, %c0_18, %c0_19] : memref<1x8x128xf32, #tpu.memory_space<vmem>>, vector<1x8x128xf32>
      %43 = vector.shape_cast %42 : vector<1x8x128xf32> to vector<8x128xf32>
      %44 = vector.shape_cast %41 : vector<8x128xf32> to vector<1x8x128xf32>
      tpu.vector_store %arg4[%c0_17, %c0_18, %c0_19], %44 {strides = array<i32>} : memref<1x8x128xf32, #tpu.memory_space<vmem>>, vector<1x8x128xf32>,
    } else {
    }
    return
  }
  func.func @transform_0(%arg0: i32, %arg1: i32) -> (i32, i32) {
    %c1_i32 = arith.constant 1 : i32
    %0 = arith.muli %arg0, %c1_i32 : i32
    %1 = arith.addi %0, %arg1 : i32
    %c0_i32 = arith.constant 0 : i32
    %2 = arith.minsi %1, %c0_i32 : i32
    %c0_i32_0 = arith.constant 0 : i32
    %c0_i32_1 = arith.constant 0 : i32
    return %2, %c0_i32_0 : i32, i32
  }
  func.func @transform_1(%arg0: i32, %arg1: i32) -> (i32, i32) {
    %c1_i32 = arith.constant 1 : i32
    %0 = arith.muli %arg0, %c1_i32 : i32
    %1 = arith.addi %0, %arg1 : i32
    %c0_i32 = arith.constant 0 : i32
    %2 = arith.minsi %1, %c0_i32 : i32
    %c0_i32_0 = arith.constant 0 : i32
    %c0_i32_1 = arith.constant 0 : i32
    return %2, %c0_i32_0 : i32, i32
  }
  func.func @transform_2(%arg0: i32, %arg1: i32) -> (i32, i32, i32) {
    %c0_i32 = arith.constant 0 : i32
    %c0_i32_0 = arith.constant 0 : i32
    %c0_i32_1 = arith.constant 0 : i32
    return %arg0, %c0_i32, %c0_i32_0 : i32, i32, i32
  }
}

</mosaic_0001>

<bundles_post_ra>
// kernel: tpu_custom_call.1
= control target key start
LH: loop header
LB: loop body
LE: loop exit
PB: predicated region body
PF: predicated region fallthrough
CT: control target
= control target key end

     0   :  { %7 = vsyncpa [#allocation3], 0  ;;  %s306_s0 = inlined_call_operand.hbm [shape: f32[16,128], index: 0, kind: input, shape index: {}]   ;;  %s307_s1 = inlined_call_operand.hbm [shape: f32[16,128], index: 1, kind: input, shape index: {}]   ;;  %s308_s2 = inlined_call_operand.hbm [shape: f32[1,8,128], index: 2, kind: output, shape index: {}]  }
   0x1   :  { %8 = vsyncpa [#allocation6], 0 }
   0x2   :  { %9 = vsyncpa [#allocation4], 0  ;;  %s250_s9 = smov [#allocation2]   ;;  %s178_s13 = scalar_lea.hbm %s306_s0, 256 }
   0x3   :  { %s21_s10 = sshll.u32 %s250_s9, 4  ;;  %p179_p0 = scmp.ne.s32.totalorder %s306_s0, %s178_s13  ;;  %s22_s10 = int_to_ptr.vmem [resolvable:$true] %s21_s10 }
   0x4   :  { %p182_p1 = scmp.lt.u32.totalorder %s178_s13, %s306_s0 }
   0x6   :  { %p184_p2 = pnand %p182_p1, %p179_p0 }
   0x8   :  { %187 = shalt.err (!%p184_p2)
}
   0x9   :  { %s188_s18 = scalar_lea.vmem %s22_s10, 256  ;;  %p193_p4 = scmp.lt.s32.totalorder %s22_s10, %s22_s10 }
   0xa   :  { %p189_p3 = scmp.ne.s32.totalorder %s22_s10, %s188_s18  ;;  %p194_p5 = scmp.lt.s32.totalorder %s188_s18, %s188_s18 }
   0xc   :  { %p195_p6 = por %p194_p5, %p193_p4 }
   0xe   :  { %p196_p7 = pnand %p195_p6, %p189_p3 }
  0x10   :  { %199 = shalt.err (!%p196_p7)
}
  0x11   :  { %s251_s19 = smov 128   ;;  %s252_s20 = smov 8  }
  0x12   :  { %27 = dma.hbm_to_vmem [thread:$0]  %s306_s0, 256, %s22_s10, [#allocation3], %s251_s19, %s251_s19, %s252_s20  }
  0x13   :  { %s253_s23 = smov [#allocation5]   ;;  %s200_s27 = scalar_lea.hbm %s307_s1, 256 }
  0x14   :  { %s39_s24 = sshll.u32 %s253_s23, 4  ;;  %p201_p8 = scmp.ne.s32.totalorder %s307_s1, %s200_s27  ;;  %s40_s24 = int_to_ptr.vmem [resolvable:$true] %s39_s24 }
  0x15   :  { %p204_p9 = scmp.lt.u32.totalorder %s200_s27, %s307_s1 }
  0x17   :  { %p206_p10 = pnand %p204_p9, %p201_p8 }
  0x19   :  { %209 = shalt.err (!%p206_p10)
}
  0x1a   :  { %s210_s4 = scalar_lea.vmem %s40_s24, 256  ;;  %p215_p12 = scmp.lt.s32.totalorder %s40_s24, %s40_s24 }
  0x1b   :  { %p211_p11 = scmp.ne.s32.totalorder %s40_s24, %s210_s4  ;;  %p216_p13 = scmp.lt.s32.totalorder %s210_s4, %s210_s4 }
  0x1d   :  { %p217_p0 = por %p216_p13, %p215_p12 }
  0x1f   :  { %p218_p1 = pnand %p217_p0, %p211_p11 }
  0x21   :  { %221 = shalt.err (!%p218_p1)
}
  0x22   :  { %45 = dma.hbm_to_vmem [thread:$0]  %s307_s1, 256, %s40_s24, [#allocation6], %s251_s19, %s251_s19, %s252_s20  }
  0x23   :  { %244 = dma.done.wait [#allocation3], 256  }
  0x24   :  { %245 = vsyncadd [#allocation3], 4294967040 }
  0x25   :  { %246 = dma.done.wait [#allocation6], 256  }
  0x26   :  { %247 = vsyncadd [#allocation6], 4294967040  ;;  %v66_v0 = vld [vmem:[#allocation2] sm:$0xff]  ;;  %v67_v1 = vld [vmem:[#allocation2 + $0x8] sm:$0xff]  ;;  %s254_s1 = smov [#allocation7]  }
  0x27   :  { %v68_v2 = vld [vmem:[#allocation5] sm:$0xff]  ;;  %v69_v3 = vld [vmem:[#allocation5 + $0x8] sm:$0xff]  ;;  %v88_v5 = vsub.f32 1.0, %v66_v0  ;;  %v89_v6 = vsub.f32 1.0, %v67_v1  ;;  %s150_s6 = sshll.u32 %s254_s1, 4  ;;  %s151_s6 = int_to_ptr.vmem [resolvable:$true] %s150_s6 }
  0x28   :  { %v70_v4 = vmul.f32 %v68_v2, %v66_v0  ;;  %v90_v7 = vsub.f32 1.0, %v68_v2  ;;  %v71_v8 = vmul.f32 %v69_v3, %v67_v1  ;;  %v91_v9 = vsub.f32 1.0, %v69_v3  ;;  %s222_s7 = scalar_lea.vmem %s151_s6, 128  ;;  %p227_p3 = scmp.lt.s32.totalorder %s151_s6, %s151_s6 }
  0x29   :  { %p223_p2 = scmp.ne.s32.totalorder %s151_s6, %s222_s7  ;;  %p228_p4 = scmp.lt.s32.totalorder %s222_s7, %s222_s7 }
  0x2a   :  { %v72_v10 = vadd.f32 1e-08, %v70_v4  ;;  %v92_v11 = vmul.f32 %v90_v7, %v88_v5  ;;  %v73_v12 = vadd.f32 1e-08, %v71_v8  ;;  %v93_v13 = vmul.f32 %v91_v9, %v89_v6 }
  0x2b   :  { %p229_p5 = por %p228_p4, %p227_p3 }
  0x2c   :  { %170 = vrsqrt.f32 %v72_v10  ;;  %v94_v14 = vadd.f32 1e-08, %v92_v11  ;;  %v95_v15 = vadd.f32 1e-08, %v93_v13  ;;  %vm76_vm0 = vcmp.eq.f32.partialorder %v72_v10, inf }
  0x2d   :  { %172 = vrsqrt.f32 %v73_v12  ;;  %vm83_vm1 = vcmp.eq.f32.partialorder %v73_v12, inf  ;;  %v79_v19 = vand.u32 2147483648, %v72_v10  ;;  %vm78_vm2 = vcmp.eq.f32.partialorder %v72_v10, 0.0  ;;  %p230_p6 = pnand %p229_p5, %p223_p2 }
  0x2e   :  { %174 = vrsqrt.f32 %v94_v14  ;;  %v86_v22 = vand.u32 2147483648, %v73_v12  ;;  %vm85_vm3 = vcmp.eq.f32.partialorder %v73_v12, 0.0  ;;  %vm98_vm4 = vcmp.eq.f32.partialorder %v94_v14, inf }
  0x2f   :  { %176 = vrsqrt.f32 %v95_v15  ;;  %v101_v25 = vand.u32 2147483648, %v94_v14  ;;  %vm100_vm5 = vcmp.eq.f32.partialorder %v94_v14, 0.0  ;;  %vm105_vm6 = vcmp.eq.f32.partialorder %v95_v15, inf }
  0x30   :  { %v108_v28 = vand.u32 2147483648, %v95_v15  ;;  %vm107_vm7 = vcmp.eq.f32.partialorder %v95_v15, 0.0 }
  0x36   :  { %v171_v16 = vpop.eup %170 }
  0x37   :  { %v173_v17 = vpop.eup %172  ;;  %v75_v18 = vmul.f32 %v171_v16, %v72_v10 }
  0x38   :  { %v82_v20 = vmul.f32 %v173_v17, %v73_v12  ;;  %v175_v23 = vpop.eup %174 }
  0x39   :  { %v77_v21 = vsel %vm76_vm0, %v72_v10, %v75_v18  ;;  %v177_v26 = vpop.eup %176  ;;  %v97_v27 = vmul.f32 %v175_v23, %v94_v14 }
  0x3a   :  { %v84_v24 = vsel %vm83_vm1, %v73_v12, %v82_v20  ;;  %v80_v29 = vsel %vm78_vm2, %v79_v19, %v77_v21  ;;  %v104_v30 = vmul.f32 %v177_v26, %v95_v15 }
  0x3b   :  { %v87_v31 = vsel %vm85_vm3, %v86_v22, %v84_v24  ;;  %v99_v32 = vsel %vm98_vm4, %v94_v14, %v97_v27 }
  0x3c   :  { %v102_v33 = vsel %vm100_vm5, %v101_v25, %v99_v32  ;;  %v106_v34 = vsel %vm105_vm6, %v95_v15, %v104_v30 }
  0x3d   :  { %v109_v35 = vsel %vm107_vm7, %v108_v28, %v106_v34  ;;  %v110_v36 = vadd.f32 %v102_v33, %v80_v29 }
  0x3e   :  { %v111_v37 = vadd.f32 %v109_v35, %v87_v31 }
  0x40   :  { %v117_v38 = vadd.f32 %v111_v37, %v110_v36 }
  0x42   :  { %119 = vst [vmem:[#allocation7] sm:$0xff] %v117_v38 }
  0x43   :  { %233 = shalt.err (!%p230_p6)
}
  0x44   :  { %s234_s10 = scalar_lea.hbm %s308_s2, 128 }
  0x45   :  { %p235_p7 = scmp.ne.s32.totalorder %s308_s2, %s234_s10  ;;  %p238_p8 = scmp.lt.u32.totalorder %s234_s10, %s308_s2 }
  0x47   :  { %p240_p9 = pnand %p238_p8, %p235_p7 }
  0x49   :  { %243 = shalt.err (!%p240_p9)
}
  0x4a   :  { %153 = dma.vmem_to_hbm [thread:$0]  %s151_s6, 128, %s308_s2, [#allocation4]  }
  0x4b   :  { %248 = dma.done.wait [#allocation4], 128  }
  0x4c   :  { %249 = vsyncadd [#allocation4], 4294967168 }
  0x4d   :  { %157 = vsyncpa [#allocation3], 1 }
  0x4e   :  { %158 = vsyncpa [#allocation6], 1 }
  0x4f   :  { %159 = vsyncpa [#allocation4], 1 }

</bundles_post_ra>
